<compile_context>
chip_gen: v5e
topology: v5e:2x2
jax: 0.10.0
libtpu: 0.0.40
codegen_flags: <defaults>
</compile_context>

<pallas_src>
import functools

import jax
import jax.numpy as jnp
from jax.experimental import pallas as pl
from jax.experimental.pallas import tpu as pltpu


def _round_up(x, m):
    return (x + m - 1) // m * m


def _fused_heads_kernel(x_ref, w_ref, b_ref, out_ref, acc_ref):
    """One fused (B_tile, F_tile) x (F_tile, Npad) matmul with K-accumulation.

    x_ref:   (tb, tk)    feature tile
    w_ref:   (tk, Npad)  fused [W_fc.T | W_aux.T | 0-pad] weight tile
    b_ref:   (1, Npad)   fused, 0-padded bias
    out_ref: (tb, Npad)  fused, lane-dense output tile
    acc_ref: (tb, Npad)  f32 VMEM accumulator (persists across K steps)
    """
    k = pl.program_id(1)

    @pl.when(k == 0)
    def _():
        acc_ref[...] = jnp.zeros_like(acc_ref)

    acc_ref[...] += jnp.dot(
        x_ref[...], w_ref[...], preferred_element_type=jnp.float32
    )

    @pl.when(k == pl.num_programs(1) - 1)
    def _():
        # Bias add in f32, single broadcast, then one lane-dense store.
        out_ref[...] = (acc_ref[...] + b_ref[...]).astype(out_ref.dtype)


def _pick_tiles(B, F):
    """Choose (tb, tk) respecting the (8, 128) layout constraint."""
    tb = min(_round_up(max(B, 1), 8), 256)
    if F >= 1024 and F % 512 == 0:
        tk = 512
    elif F >= 512 and F % 256 == 0:
        tk = 256
    else:
        tk = F  # full-K block (legal because it equals the full array dim)
    return tb, tk


def fused_heads_matmul(x, w_fused, b_fused, *, use_bf16=False):
    """Compute x @ w_fused + b_fused with a tiled Pallas kernel.

    x:       (B, F)        float32 features
    w_fused: (F, Npad)     pre-transposed, concatenated, 128-padded weights
    b_fused: (1, Npad)     concatenated, 128-padded bias
    Returns  (B, Npad)     float32 fused head outputs (caller slices C / A).
    """
    B, F = x.shape
    Npad = w_fused.shape[1]

    tb, tk = _pick_tiles(B, F)
    B_pad = _round_up(B, tb)
    if B_pad != B:
        x = jnp.pad(x, ((0, B_pad - B), (0, 0)))

    if use_bf16:
        # TODO(synk): expose per-head dtype control (fp8 weights on v7x).
        x = x.astype(jnp.bfloat16)
        w_fused = w_fused.astype(jnp.bfloat16)

    grid = (B_pad // tb, F // tk)
    elem = 4  # f32 (or bf16 inputs; budget conservatively with 4B)
    # Double-buffered inputs + outputs + accumulator, with 2x headroom;
    # kept well under v7x's 32 MiB scoped / 64 MiB physical VMEM.
    vmem_needed = elem * (
        2 * tb * tk + 2 * tk * Npad + 2 * Npad + 2 * tb * Npad + tb * Npad
    )
    vmem_limit = min(max(2 * vmem_needed, 4 << 20), 48 << 20)

    cost = pl.CostEstimate(
        flops=2 * B_pad * F * Npad,
        transcendentals=0,
        bytes_accessed=elem * (B_pad * F + F * Npad + Npad + B_pad * Npad),
    )

    out = pl.pallas_call(
        _fused_heads_kernel,
        out_shape=jax.ShapeDtypeStruct((B_pad, Npad), jnp.float32),
        grid_spec=pltpu.PrefetchScalarGridSpec(
            num_scalar_prefetch=0,
            grid=grid,
            in_specs=[
                pl.BlockSpec((tb, tk), lambda i, k: (i, k)),
                pl.BlockSpec((tk, Npad), lambda i, k: (k, 0)),
                pl.BlockSpec((1, Npad), lambda i, k: (0, 0)),
            ],
            out_specs=pl.BlockSpec((tb, Npad), lambda i, k: (i, 0)),
            scratch_shapes=[pltpu.VMEM((tb, Npad), jnp.float32)],
        ),
        compiler_params=pltpu.CompilerParams(
            dimension_semantics=("parallel", "arbitrary"),
            vmem_limit_bytes=vmem_limit,
        ),
        cost_estimate=cost,
    )(x, w_fused, b_fused)

    return out[:B]


class COOkeDNetJax:
    """JAX/Pallas port of COOkeDNet with backbone_type='none'.

    backbone == identity on the feature vector; fc and aux_fc are fused into
    a single lane-dense Pallas matmul. Weights are stored pre-transposed,
    concatenated and 128-padded at __init__ (no per-call transpose / concat).
    """

    def __init__(self, num_classes, aux_dim, feature_size, key):
        k1, k2, k3, k4 = jax.random.split(key, 4)
        bound = 1.0 / jnp.sqrt(feature_size)
        # Keep PyTorch-layout copies around for get_fc().
        self.w_fc = jax.random.uniform(
            k1, (num_classes, feature_size), jnp.float32, -bound, bound)
        self.b_fc = jax.random.uniform(
            k2, (num_classes,), jnp.float32, -bound, bound)
        self.w_aux = jax.random.uniform(
            k3, (aux_dim, feature_size), jnp.float32, -bound, bound)
        self.b_aux = jax.random.uniform(
            k4, (aux_dim,), jnp.float32, -bound, bound)

        self.num_classes = num_classes
        self.aux_dim = aux_dim

        # One-time fusion + padding (done here, NOT per forward call).
        n_total = num_classes + aux_dim
        n_pad = _round_up(n_total, 128)
        w_cat = jnp.concatenate(
            [jnp.transpose(self.w_fc), jnp.transpose(self.w_aux)], axis=1
        )  # (F, C+A)
        b_cat = jnp.concatenate([self.b_fc, self.b_aux])  # (C+A,)
        self.w_fused = jnp.pad(w_cat, ((0, 0), (0, n_pad - n_total)))
        self.b_fused = jnp.pad(b_cat, (0, n_pad - n_total)).reshape(1, n_pad)

    def forward(self, x, return_aux_logits=False, return_feature=False,
                use_bf16=False):
        # backbone(x, return_feature=True) -> (None, x) for backbone_type='none'
        feature = x
        fused = fused_heads_matmul(
            feature, self.w_fused, self.b_fused, use_bf16=use_bf16)
        logits = fused[:, : self.num_classes]
        aux_logits = fused[:, self.num_classes: self.num_classes + self.aux_dim]
        if return_aux_logits and return_feature:
            return (logits, aux_logits, feature)
        elif return_aux_logits:
            return (logits, aux_logits)
        elif return_feature:
            return (logits, feature)
        else:
            return logits

    def get_fc(self):
        return (jax.device_get(self.w_fc), jax.device_get(self.b_fc))

    # TODO(synk): forward_threshold requires backbone.forward_threshold, which
    # does not exist for backbone_type='none'; not implemented.


if __name__ == "__main__":
    key = jax.random.PRNGKey(0)
    k_in, k_params = jax.random.split(key)

    B = 8            # batch
    F = 32           # feature_size
    NUM_CLASSES = 10
    AUX_DIM = 4

    x = jax.random.normal(k_in, (B, F), dtype=jnp.float32)

    model = COOkeDNetJax(NUM_CLASSES, AUX_DIM, F, k_params)

    logits, aux_logits, feature = model.forward(
        x, return_aux_logits=True, return_feature=True)
    jax.block_until_ready((logits, aux_logits, feature))

    # Sanity check against plain-JAX reference.
    ref_logits = x @ model.w_fc.T + model.b_fc
    ref_aux = x @ model.w_aux.T + model.b_aux
    assert logits.shape == (B, NUM_CLASSES)
    assert aux_logits.shape == (B, AUX_DIM)
    assert feature.shape == (B, F)
    assert jnp.allclose(logits, ref_logits, atol=1e-5, rtol=1e-5)
    assert jnp.allclose(aux_logits, ref_aux, atol=1e-5, rtol=1e-5)

    # Exercise the other return modes once for coverage.
    only_logits = model.forward(x)
    jax.block_until_ready(only_logits)
    assert jnp.allclose(only_logits, ref_logits, atol=1e-5, rtol=1e-5)

    print("KERNEL_OK")
</pallas_src>

<mosaic_0001>
module attributes {stable_mosaic.version = 11 : i64} {
  func.func @_fused_heads_kernel(%arg0: i32, %arg1: i32, %arg2: memref<8x32xf32, #tpu.memory_space<vmem>>, %arg3: memref<32x128xf32, #tpu.memory_space<vmem>>, %arg4: memref<1x128xf32, #tpu.memory_space<vmem>>, %arg5: memref<8x128xf32, #tpu.memory_space<vmem>>, %arg6: memref<8x128xf32, #tpu.memory_space<vmem>>) attributes {dimension_semantics = [#tpu.dimension_semantics<parallel>, #tpu.dimension_semantics<arbitrary>], iteration_bounds = array<i64: 1, 1>, scalar_prefetch = 0 : i64, scratch_operands = 1 : i64, tpu.core_type = #tpu.core_type<tc>, window_params = [{transform_indices = @transform_0, window_bounds = array<i64: 8, 32>}, {transform_indices = @transform_1, window_bounds = array<i64: 32, 128>}, {pipeline_mode = #tpu.pipeline_mode<synchronous>, transform_indices = @transform_2, window_bounds = array<i64: 1, 128>}, {transform_indices = @transform_3, window_bounds = array<i64: 8, 128>}]} {
    %c0_i32 = arith.constant 0 : i32
    %0 = arith.cmpi eq, %arg1, %c0_i32 : i32
    %1 = arith.extui %0 : i1 to i32
    %c0_i32_0 = arith.constant 0 : i32
    %2 = arith.cmpi ne, %1, %c0_i32_0 : i32
    scf.if %2 {
      %cst_10 = arith.constant 0.000000e+00 : f32
      %12 = vector.broadcast %cst_10 : f32 to vector<8x128xf32>
      %c0_11 = arith.constant 0 : index
      %c0_12 = arith.constant 0 : index
      %13 = vector.load %arg6[%c0_11, %c0_12] : memref<8x128xf32, #tpu.memory_space<vmem>>, vector<8x128xf32>
      tpu.vector_store %arg6[%c0_11, %c0_12], %12 {strides = array<i32>} : memref<8x128xf32, #tpu.memory_space<vmem>>, vector<8x128xf32>,
    } else {
    }
    %c0 = arith.constant 0 : index
    %c0_1 = arith.constant 0 : index
    %3 = vector.load %arg6[%c0, %c0_1] : memref<8x128xf32, #tpu.memory_space<vmem>>, vector<8x128xf32>
    %c0_2 = arith.constant 0 : index
    %c0_3 = arith.constant 0 : index
    %4 = vector.load %arg2[%c0_2, %c0_3] : memref<8x32xf32, #tpu.memory_space<vmem>>, vector<8x32xf32>
    %c0_4 = arith.constant 0 : index
    %c0_5 = arith.constant 0 : index
    %5 = vector.load %arg3[%c0_4, %c0_5] : memref<32x128xf32, #tpu.memory_space<vmem>>, vector<32x128xf32>
    %cst = arith.constant dense<0.000000e+00> : vector<8x128xf32>
    %6 = tpu.matmul %4, %5, %cst {dimension_numbers = #tpu.dot_dimension_numbers<[1], [0], [0], [1], [0, 0, 1, 1], [], []>} : vector<8x32xf32>, vector<32x128xf32>, vector<8x128xf32> -> vector<8x128xf32>
    %7 = arith.addf %3, %6 : vector<8x128xf32>
    %c0_6 = arith.constant 0 : index
    %c0_7 = arith.constant 0 : index
    %8 = vector.load %arg6[%c0_6, %c0_7] : memref<8x128xf32, #tpu.memory_space<vmem>>, vector<8x128xf32>
    tpu.vector_store %arg6[%c0_6, %c0_7], %7 {strides = array<i32>} : memref<8x128xf32, #tpu.memory_space<vmem>>, vector<8x128xf32>,
    %c0_i32_8 = arith.constant 0 : i32
    %9 = arith.cmpi eq, %arg1, %c0_i32_8 : i32
    %10 = arith.extui %9 : i1 to i32
    %c0_i32_9 = arith.constant 0 : i32
    %11 = arith.cmpi ne, %10, %c0_i32_9 : i32
    scf.if %11 {
      %c0_10 = arith.constant 0 : index
      %c0_11 = arith.constant 0 : index
      %12 = vector.load %arg6[%c0_10, %c0_11] : memref<8x128xf32, #tpu.memory_space<vmem>>, vector<8x128xf32>
      %c0_12 = arith.constant 0 : index
      %c0_13 = arith.constant 0 : index
      %13 = vector.load %arg4[%c0_12, %c0_13] : memref<1x128xf32, #tpu.memory_space<vmem>>, vector<1x128xf32>
      %14 = vector.broadcast %13 : vector<1x128xf32> to vector<8x128xf32>
      %15 = arith.addf %12, %14 : vector<8x128xf32>
      %c0_14 = arith.constant 0 : index
      %c0_15 = arith.constant 0 : index
      %16 = vector.load %arg5[%c0_14, %c0_15] : memref<8x128xf32, #tpu.memory_space<vmem>>, vector<8x128xf32>
      tpu.vector_store %arg5[%c0_14, %c0_15], %15 {strides = array<i32>} : memref<8x128xf32, #tpu.memory_space<vmem>>, vector<8x128xf32>,
    } else {
    }
    return
  }
  func.func @transform_0(%arg0: i32, %arg1: i32) -> (i32, i32) {
    %c0_i32 = arith.constant 0 : i32
    return %arg0, %arg1 : i32, i32
  }
  func.func @transform_1(%arg0: i32, %arg1: i32) -> (i32, i32) {
    %c0_i32 = arith.constant 0 : i32
    %c0_i32_0 = arith.constant 0 : i32
    return %arg1, %c0_i32 : i32, i32
  }
  func.func @transform_2(%arg0: i32, %arg1: i32) -> (i32, i32) {
    %c0_i32 = arith.constant 0 : i32
    %c0_i32_0 = arith.constant 0 : i32
    %c0_i32_1 = arith.constant 0 : i32
    return %c0_i32, %c0_i32_0 : i32, i32
  }
  func.func @transform_3(%arg0: i32, %arg1: i32) -> (i32, i32) {
    %c0_i32 = arith.constant 0 : i32
    %c0_i32_0 = arith.constant 0 : i32
    return %arg0, %c0_i32 : i32, i32
  }
}

</mosaic_0001>

<bundles_post_ra>
// kernel: tpu_custom_call.1
= control target key start
LH: loop header
LB: loop body
LE: loop exit
PB: predicated region body
PF: predicated region fallthrough
CT: control target
= control target key end

     0   :  { %8 = vsyncpa [#allocation4], 0  ;;  %s232_s0 = inlined_call_operand.hbm [shape: f32[8,32], index: 0, kind: input, shape index: {}]   ;;  %s233_s1 = inlined_call_operand.hbm [shape: f32[32,128], index: 1, kind: input, shape index: {}]   ;;  %s234_s2 = inlined_call_operand.vmem [shape: f32[1,128], index: 2, kind: input, shape index: {}]   ;;  %s235_s3 = inlined_call_operand.hbm [shape: f32[8,128], index: 3, kind: output, shape index: {}]  }
   0x1   :  { %9 = vsyncpa [#allocation7], 0 }
   0x2   :  { %10 = vsyncpa [#allocation5], 0  ;;  %s16_s14 = sshll.u32 %s232_s0, 4  ;;  %s195_s15 = smov [#allocation3]   ;;  %s17_s14 = int_to_ptr.hbm [resolvable:$true] %s16_s14 }
   0x3   :  { %s18_s16 = sshll.u32 %s195_s15, 4  ;;  %s26_s19 = sshll.u32 %s233_s1, 4  ;;  %s19_s16 = int_to_ptr.vmem [resolvable:$true] %s18_s16  ;;  %s27_s19 = int_to_ptr.hbm [resolvable:$true] %s26_s19 }
   0x4   :  { %21 = dma.hbm_to_vmem [thread:$0]  %s17_s14, 128, %s19_s16, [#allocation4]  }
   0x5   :  { %s196_s20 = smov [#allocation6]   ;;  %s197_s22 = smov 128  }
   0x6   :  { %s28_s21 = sshll.u32 %s196_s20, 4  ;;  %s198_s23 = smov 8   ;;  %s29_s21 = int_to_ptr.vmem [resolvable:$true] %s28_s21 }
   0x7   :  { %34 = dma.hbm_to_vmem [thread:$0]  %s27_s19, 512, %s29_s21, [#allocation7], %s197_s22, %s197_s22, %s198_s23  }
   0x8   :  { %189 = dma.done.wait [#allocation4], 128  }
   0x9   :  { %190 = vsyncadd [#allocation4], 4294967168 }
   0xa   :  { %191 = dma.done.wait [#allocation7], 512  }
   0xb   :  { %192 = vsyncadd [#allocation7], 4294966784  ;;  %v55_v0 = vld [vmem:[#allocation6 + $0x18] sm:$0xff]  ;;  %v54_v1 = vld [vmem:[#allocation6 + $0x10] sm:$0xff]  ;;  %vm56_vm0 = vcmask 261120   ;;  %s199_s24 = smov [#allocation8]  }
   0xc   :  { %72 = vmatpush.msra.mxu0 %v55_v0  ;;  %v53_v2 = vld [vmem:[#allocation6 + $0x8] sm:$0xff]  ;;  %v52_v3 = vld [vmem:[#allocation6] sm:$0xff]  ;;  %v51_v4 = vld [vmem:[#allocation3] sm:$0xff]  ;;  %s97_s25 = sshll.u32 %s199_s24, 4  ;;  %s99_s28 = sshll.u32 %s235_s3, 4  ;;  %s98_s25 = int_to_ptr.vmem [resolvable:$true] %s97_s25  ;;  %s100_s28 = int_to_ptr.hbm [resolvable:$true] %s99_s28 }
   0xd   :  { %v116_v5 = vld [vmem:[%s234_s2] ss:$0 sm:$0xff] }
   0xe   :  { %73 = vmatpush.msra.mxu0 %v54_v1 }
  0x10   :  { %74 = vmatpush.msra.mxu0 %v53_v2 }
  0x12   :  { %75 = vmatpush.msra.mxu0 %v52_v3 }
  0x13   :  { %110 = vmatmul.msk.f32.vlgmr.msra.gmra.mxu0 %vm56_vm0, %v51_v4 }
  0x90   :  { %v77_v6 = vpop.f32.mrf.mxu0 }
  0x91   :  { %v90_v7 = vadd.f32 %v116_v5, %v77_v6 }
  0x93   :  { %91 = vst [vmem:[#allocation8] sm:$0xff] %v90_v7 }
  0x94   :  { %102 = dma.vmem_to_hbm [thread:$0]  %s98_s25, 128, %s100_s28, [#allocation5]  }
  0x95   :  { %193 = dma.done.wait [#allocation5], 128  }
  0x96   :  { %194 = vsyncadd [#allocation5], 4294967168 }
  0x97   :  { %107 = vsyncpa [#allocation4], 1 }
  0x98   :  { %108 = vsyncpa [#allocation7], 1 }
  0x99   :  { %109 = vsyncpa [#allocation5], 1 }

</bundles_post_ra>
